<compile_context>
chip_gen: v6e
topology: v6e:2x2x1
jax: 0.10.0
libtpu: 0.0.40
codegen_flags: <defaults>
</compile_context>

<pallas_src>
import functools

import jax
import jax.numpy as jnp
from jax.experimental import pallas as pl
from jax.experimental.pallas import tpu as pltpu

NEG_SLOPE = 0.01
HIDDEN = 512


def _round_up(x, m):
    return (x + m - 1) // m * m


def _leaky_relu(v):
    return jnp.where(v > 0, v, NEG_SLOPE * v)


def generator_kernel(x_ref, w1_ref, b1_ref, w2_ref, b2_ref, o_ref):
    # Linear 1: bf16 x bf16 -> f32 accumulate on the MXU, then bias + LeakyReLU in f32.
    h = jnp.dot(x_ref[...], w1_ref[...], preferred_element_type=jnp.float32)
    h = _leaky_relu(h + b1_ref[...])
    # Linear 2: re-cast the hidden activations to bf16 so this dot is also a
    # native bf16 MXU pass; accumulate in f32.
    y = jnp.dot(h.astype(w2_ref.dtype), w2_ref[...],
                preferred_element_type=jnp.float32)
    y = _leaky_relu(y + b2_ref[...])
    o_ref[...] = y.astype(o_ref.dtype)


@functools.partial(jax.jit, static_argnames=("block_b",))
def generator_forward(x, w1, b1, w2, b2, *, block_b=256):
    """x: (B, z_dim) f32. w1: (z_dim, 512), w2: (512, img_dim) f32 (stored
    pre-transposed as (in, out)). Returns (B, img_dim) f32."""
    B, z_dim = x.shape
    hidden, img_dim = w2.shape

    # Pad to MXU / vreg friendly shapes: lane dims -> multiples of 128,
    # batch (sublane) dim -> multiple of 8 (or a full 256-row tile).
    K = _round_up(z_dim, 128)
    N = _round_up(img_dim, 128)
    tile_b = block_b if B >= block_b else _round_up(B, 8)
    Bp = _round_up(B, tile_b)

    # bf16 operands for the MXU (zero padding contributes nothing); biases f32.
    x_p = jnp.zeros((Bp, K), jnp.bfloat16).at[:B, :z_dim].set(
        x.astype(jnp.bfloat16))
    w1_p = jnp.zeros((K, hidden), jnp.bfloat16).at[:z_dim, :].set(
        w1.astype(jnp.bfloat16))
    w2_p = jnp.zeros((hidden, N), jnp.bfloat16).at[:, :img_dim].set(
        w2.astype(jnp.bfloat16))
    b1_p = b1.reshape(1, hidden).astype(jnp.float32)
    b2_p = jnp.zeros((1, N), jnp.float32).at[:, :img_dim].set(
        b2.reshape(1, img_dim).astype(jnp.float32))

    grid = (Bp // tile_b,)
    flops = 2 * Bp * (K * hidden + hidden * N)
    bytes_accessed = (x_p.size * 2 + w1_p.size * 2 + w2_p.size * 2
                      + b1_p.size * 4 + b2_p.size * 4 + Bp * N * 4)

    out = pl.pallas_call(
        generator_kernel,
        out_shape=jax.ShapeDtypeStruct((Bp, N), jnp.float32),
        grid=grid,
        in_specs=[
            pl.BlockSpec((tile_b, K), lambda i: (i, 0)),   # x: tiled over batch
            pl.BlockSpec((K, hidden), lambda i: (0, 0)),   # w1: VMEM-resident
            pl.BlockSpec((1, hidden), lambda i: (0, 0)),   # b1
            pl.BlockSpec((hidden, N), lambda i: (0, 0)),   # w2: VMEM-resident
            pl.BlockSpec((1, N), lambda i: (0, 0)),        # b2
        ],
        out_specs=pl.BlockSpec((tile_b, N), lambda i: (i, 0)),
        compiler_params=pltpu.CompilerParams(
            # Batch tiles are independent -> shard across TensorCores on v7x.
            dimension_semantics=("parallel",),
        ),
        cost_estimate=pl.CostEstimate(
            flops=flops, transcendentals=0, bytes_accessed=bytes_accessed),
    )(x_p, w1_p, b1_p, w2_p, b2_p)

    return out[:B, :img_dim]


def init_generator_params(key, z_dim, img_dim, hidden=HIDDEN):
    """PyTorch-nn.Linear-style init (uniform +/- 1/sqrt(fan_in)), f32 master
    weights stored as (in_features, out_features) so the kernel does x @ W."""
    k1, k2, k3, k4 = jax.random.split(key, 4)
    bound1 = 1.0 / (z_dim ** 0.5)
    bound2 = 1.0 / (hidden ** 0.5)
    w1 = jax.random.uniform(k1, (z_dim, hidden), jnp.float32, -bound1, bound1)
    b1 = jax.random.uniform(k2, (1, hidden), jnp.float32, -bound1, bound1)
    w2 = jax.random.uniform(k3, (hidden, img_dim), jnp.float32, -bound2, bound2)
    b2 = jax.random.uniform(k4, (1, img_dim), jnp.float32, -bound2, bound2)
    return w1, b1, w2, b2


if __name__ == "__main__":
    z_dim = 64
    img_dim = 784   # e.g. 28x28 images; deliberately not a multiple of 128
    batch = 8

    key = jax.random.PRNGKey(0)
    k_params, k_x = jax.random.split(key)

    w1, b1, w2, b2 = init_generator_params(k_params, z_dim, img_dim)
    x = jax.random.normal(k_x, (batch, z_dim), jnp.float32)

    out = generator_forward(x, w1, b1, w2, b2)
    out = jax.block_until_ready(out)
    assert out.shape == (batch, img_dim)

    def leaky(v):
        return jnp.where(v > 0, v, NEG_SLOPE * v)

    # Reference with the same mixed precision the kernel uses
    # (bf16 matmul operands, f32 accumulation / bias / activation).
    xb = x.astype(jnp.bfloat16).astype(jnp.float32)
    w1b = w1.astype(jnp.bfloat16).astype(jnp.float32)
    w2b = w2.astype(jnp.bfloat16).astype(jnp.float32)
    h_ref = leaky(xb @ w1b + b1)
    y_ref = leaky(h_ref.astype(jnp.bfloat16).astype(jnp.float32) @ w2b + b2)
    assert jnp.allclose(out, y_ref, atol=2e-3, rtol=2e-3), float(
        jnp.max(jnp.abs(out - y_ref)))

    # Sanity: also close to the pure-f32 PyTorch forward within bf16 tolerance.
    y_f32 = leaky(leaky(x @ w1 + b1) @ w2 + b2)
    assert float(jnp.max(jnp.abs(out - y_f32))) < 5e-2

    print("KERNEL_OK")
</pallas_src>

<mosaic_0001>
module attributes {stable_mosaic.version = 11 : i64} {
  func.func @generator_kernel(%arg0: i32, %arg1: memref<8x128xbf16, #tpu.memory_space<vmem>>, %arg2: memref<128x512xbf16, #tpu.memory_space<vmem>>, %arg3: memref<1x512xf32, #tpu.memory_space<vmem>>, %arg4: memref<512x896xbf16, #tpu.memory_space<vmem>>, %arg5: memref<1x896xf32, #tpu.memory_space<vmem>>, %arg6: memref<8x896xf32, #tpu.memory_space<vmem>>) attributes {dimension_semantics = [#tpu.dimension_semantics<parallel>], iteration_bounds = array<i64: 1>, scalar_prefetch = 0 : i64, scratch_operands = 0 : i64, tpu.core_type = #tpu.core_type<tc>, window_params = [{transform_indices = @transform_0, window_bounds = array<i64: 8, 128>}, {pipeline_mode = #tpu.pipeline_mode<synchronous>, transform_indices = @transform_1, window_bounds = array<i64: 128, 512>}, {pipeline_mode = #tpu.pipeline_mode<synchronous>, transform_indices = @transform_2, window_bounds = array<i64: 1, 512>}, {pipeline_mode = #tpu.pipeline_mode<synchronous>, transform_indices = @transform_3, window_bounds = array<i64: 512, 896>}, {pipeline_mode = #tpu.pipeline_mode<synchronous>, transform_indices = @transform_4, window_bounds = array<i64: 1, 896>}, {transform_indices = @transform_5, window_bounds = array<i64: 8, 896>}]} {
    %c0 = arith.constant 0 : index
    %c0_0 = arith.constant 0 : index
    %0 = vector.load %arg1[%c0, %c0_0] : memref<8x128xbf16, #tpu.memory_space<vmem>>, vector<8x128xbf16>
    %c0_1 = arith.constant 0 : index
    %c0_2 = arith.constant 0 : index
    %1 = vector.load %arg2[%c0_1, %c0_2] : memref<128x512xbf16, #tpu.memory_space<vmem>>, vector<128x512xbf16>
    %cst = arith.constant dense<0.000000e+00> : vector<8x512xf32>
    %2 = tpu.matmul %0, %1, %cst {dimension_numbers = #tpu.dot_dimension_numbers<[1], [0], [0], [1], [0, 0, 1, 1], [], []>} : vector<8x128xbf16>, vector<128x512xbf16>, vector<8x512xf32> -> vector<8x512xf32>
    %c0_3 = arith.constant 0 : index
    %c0_4 = arith.constant 0 : index
    %3 = vector.load %arg3[%c0_3, %c0_4] : memref<1x512xf32, #tpu.memory_space<vmem>>, vector<1x512xf32>
    %4 = vector.broadcast %3 : vector<1x512xf32> to vector<8x512xf32>
    %5 = arith.addf %2, %4 : vector<8x512xf32>
    %cst_5 = arith.constant 0.000000e+00 : f32
    %6 = vector.broadcast %cst_5 : f32 to vector<8x512xf32>
    %7 = arith.cmpf ogt, %5, %6 : vector<8x512xf32>
    %cst_6 = arith.constant 0.00999999977 : f32
    %8 = vector.broadcast %cst_6 : f32 to vector<8x512xf32>
    %9 = arith.mulf %8, %5 : vector<8x512xf32>
    %10 = arith.select %7, %5, %9 : vector<8x512xi1>, vector<8x512xf32>
    %11 = arith.truncf %10 : vector<8x512xf32> to vector<8x512xbf16>
    %c0_7 = arith.constant 0 : index
    %c0_8 = arith.constant 0 : index
    %12 = vector.load %arg4[%c0_7, %c0_8] : memref<512x896xbf16, #tpu.memory_space<vmem>>, vector<512x896xbf16>
    %cst_9 = arith.constant dense<0.000000e+00> : vector<8x896xf32>
    %13 = tpu.matmul %11, %12, %cst_9 {dimension_numbers = #tpu.dot_dimension_numbers<[1], [0], [0], [1], [0, 0, 1, 1], [], []>} : vector<8x512xbf16>, vector<512x896xbf16>, vector<8x896xf32> -> vector<8x896xf32>
    %c0_10 = arith.constant 0 : index
    %c0_11 = arith.constant 0 : index
    %14 = vector.load %arg5[%c0_10, %c0_11] : memref<1x896xf32, #tpu.memory_space<vmem>>, vector<1x896xf32>
    %15 = vector.broadcast %14 : vector<1x896xf32> to vector<8x896xf32>
    %16 = arith.addf %13, %15 : vector<8x896xf32>
    %cst_12 = arith.constant 0.000000e+00 : f32
    %17 = vector.broadcast %cst_12 : f32 to vector<8x896xf32>
    %18 = arith.cmpf ogt, %16, %17 : vector<8x896xf32>
    %cst_13 = arith.constant 0.00999999977 : f32
    %19 = vector.broadcast %cst_13 : f32 to vector<8x896xf32>
    %20 = arith.mulf %19, %16 : vector<8x896xf32>
    %21 = arith.select %18, %16, %20 : vector<8x896xi1>, vector<8x896xf32>
    %c0_14 = arith.constant 0 : index
    %c0_15 = arith.constant 0 : index
    %22 = vector.load %arg6[%c0_14, %c0_15] : memref<8x896xf32, #tpu.memory_space<vmem>>, vector<8x896xf32>
    tpu.vector_store %arg6[%c0_14, %c0_15], %21 {strides = array<i32>} : memref<8x896xf32, #tpu.memory_space<vmem>>, vector<8x896xf32>,
    return
  }
  func.func @transform_0(%arg0: i32) -> (i32, i32) {
    %c0_i32 = arith.constant 0 : i32
    %c0_i32_0 = arith.constant 0 : i32
    return %arg0, %c0_i32 : i32, i32
  }
  func.func @transform_1(%arg0: i32) -> (i32, i32) {
    %c0_i32 = arith.constant 0 : i32
    %c0_i32_0 = arith.constant 0 : i32
    %c0_i32_1 = arith.constant 0 : i32
    return %c0_i32, %c0_i32_0 : i32, i32
  }
  func.func @transform_2(%arg0: i32) -> (i32, i32) {
    %c0_i32 = arith.constant 0 : i32
    %c0_i32_0 = arith.constant 0 : i32
    %c0_i32_1 = arith.constant 0 : i32
    return %c0_i32, %c0_i32_0 : i32, i32
  }
  func.func @transform_3(%arg0: i32) -> (i32, i32) {
    %c0_i32 = arith.constant 0 : i32
    %c0_i32_0 = arith.constant 0 : i32
    %c0_i32_1 = arith.constant 0 : i32
    return %c0_i32, %c0_i32_0 : i32, i32
  }
  func.func @transform_4(%arg0: i32) -> (i32, i32) {
    %c0_i32 = arith.constant 0 : i32
    %c0_i32_0 = arith.constant 0 : i32
    %c0_i32_1 = arith.constant 0 : i32
    return %c0_i32, %c0_i32_0 : i32, i32
  }
  func.func @transform_5(%arg0: i32) -> (i32, i32) {
    %c0_i32 = arith.constant 0 : i32
    %c0_i32_0 = arith.constant 0 : i32
    return %arg0, %c0_i32 : i32, i32
  }
}

</mosaic_0001>

<bundles_post_ra>
// kernel: generator_forward.1
= control target key start
LH: loop header
LB: loop body
LE: loop exit
PB: predicated region body
PF: predicated region fallthrough
CT: control target
= control target key end

     0   :  { %v2840_v2 = vmov 0   ;;  %s3710_s0 = inlined_call_operand.vmem [shape: bf16[8,128], index: 0, kind: input, shape index: {}]   ;;  %s3711_s1 = inlined_call_operand.vmem [shape: bf16[128,512], index: 1, kind: input, shape index: {}]   ;;  %s3712_s2 = inlined_call_operand.vmem [shape: f32[1,512], index: 2, kind: input, shape index: {}]   ;;  %s3713_s3 = inlined_call_operand.vmem [shape: bf16[512,896], index: 3, kind: input, shape index: {}]   ;;  %s3714_s4 = inlined_call_operand.vmem [shape: f32[1,896], index: 4, kind: input, shape index: {}]   ;;  %s3715_s5 = inlined_call_operand.hbm [shape: f32[8,896], index: 5, kind: output, shape index: {}]  }
   0x1   :  { %v2450_v0 = vld [vmem:[%s3711_s1 + $0xe4] ss:$16 sps:$4 sm:$0xff]   ;;  %v2452_v1 = vld [vmem:[%s3711_s1 + $0xec] ss:$16 sps:$4 sm:$0xff]   ;;  %269 = vmatprep.mubr.bf16.mxu0 %v2840_v2  ;;  %310 = vmatprep.mubr.bf16.mxu1 %v2840_v2  ;;  %v2454_v3 = vld [vmem:[%s3711_s1 + $0xe0] ss:$16 sps:$4 sm:$0xff]  }
   0x2   :  { %237 = vmatprep.subr.bf16.mxu0 %v2450_v0  ;;  %v2455_v4 = vld [vmem:[%s3711_s1 + $0xe8] ss:$16 sps:$4 sm:$0xff]   ;;  %278 = vmatprep.subr.bf16.mxu1 %v2452_v1  ;;  %v2456_v5 = vld [vmem:[%s3711_s1 + $0xc4] ss:$16 sps:$4 sm:$0xff]   ;;  %v2458_v6 = vld [vmem:[%s3711_s1 + $0xcc] ss:$16 sps:$4 sm:$0xff]  }
   0x3   :  { %238 = vmatpush1.bf16.msra.mxu0 %v2454_v3  ;;  %279 = vmatpush1.bf16.msra.mxu1 %v2455_v4  ;;  %v2460_v7 = vld [vmem:[%s3711_s1 + $0xc0] ss:$16 sps:$4 sm:$0xff]   ;;  %v2461_v8 = vld [vmem:[%s3711_s1 + $0xc8] ss:$16 sps:$4 sm:$0xff]   ;;  %v2462_v9 = vld [vmem:[%s3711_s1 + $0xa4] ss:$16 sps:$4 sm:$0xff]  }
   0x4   :  { %239 = vmatprep.subr.bf16.mxu0 %v2456_v5  ;;  %280 = vmatprep.subr.bf16.mxu1 %v2458_v6  ;;  %v2464_v10 = vld [vmem:[%s3711_s1 + $0xac] ss:$16 sps:$4 sm:$0xff]   ;;  %v2466_v11 = vld [vmem:[%s3711_s1 + $0xa0] ss:$16 sps:$4 sm:$0xff]   ;;  %v2467_v12 = vld [vmem:[%s3711_s1 + $0xa8] ss:$16 sps:$4 sm:$0xff]  }
   0x5   :  { %v2468_v13 = vld [vmem:[%s3711_s1 + $0x84] ss:$16 sps:$4 sm:$0xff]   ;;  %v2470_v14 = vld [vmem:[%s3711_s1 + $0x8c] ss:$16 sps:$4 sm:$0xff]   ;;  %v2472_v15 = vld [vmem:[%s3711_s1 + $0x80] ss:$16 sps:$4 sm:$0xff]  }
   0x6   :  { %v2473_v16 = vld [vmem:[%s3711_s1 + $0x88] ss:$16 sps:$4 sm:$0xff]   ;;  %v2474_v17 = vld [vmem:[%s3711_s1 + $0x64] ss:$16 sps:$4 sm:$0xff]   ;;  %v2476_v18 = vld [vmem:[%s3711_s1 + $0x6c] ss:$16 sps:$4 sm:$0xff]  }
   0x7   :  { %240 = vmatpush1.bf16.msra.mxu0 %v2460_v7  ;;  %281 = vmatpush1.bf16.msra.mxu1 %v2461_v8  ;;  %v2478_v19 = vld [vmem:[%s3711_s1 + $0x60] ss:$16 sps:$4 sm:$0xff]   ;;  %v2479_v20 = vld [vmem:[%s3711_s1 + $0x68] ss:$16 sps:$4 sm:$0xff]   ;;  %v2480_v21 = vld [vmem:[%s3711_s1 + $0x44] ss:$16 sps:$4 sm:$0xff]  }
   0x8   :  { %241 = vmatprep.subr.bf16.mxu0 %v2462_v9  ;;  %282 = vmatprep.subr.bf16.mxu1 %v2464_v10  ;;  %v2482_v22 = vld [vmem:[%s3711_s1 + $0x4c] ss:$16 sps:$4 sm:$0xff]   ;;  %v2484_v23 = vld [vmem:[%s3711_s1 + $0x40] ss:$16 sps:$4 sm:$0xff]   ;;  %v2485_v24 = vld [vmem:[%s3711_s1 + $0x48] ss:$16 sps:$4 sm:$0xff]  }
   0x9   :  { %v2486_v25 = vld [vmem:[%s3711_s1 + $0x24] ss:$16 sps:$4 sm:$0xff]   ;;  %v2488_v26 = vld [vmem:[%s3711_s1 + $0x2c] ss:$16 sps:$4 sm:$0xff]   ;;  %v2490_v27 = vld [vmem:[%s3711_s1 + $0x20] ss:$16 sps:$4 sm:$0xff]  }
   0xa   :  { %v2491_v28 = vld [vmem:[%s3711_s1 + $0x28] ss:$16 sps:$4 sm:$0xff]   ;;  %v2492_v29 = vld [vmem:[%s3711_s1 + $0x4] ss:$16 sps:$4 sm:$0xff]   ;;  %v2494_v30 = vld [vmem:[%s3711_s1 + $0xc] ss:$16 sps:$4 sm:$0xff]  }
   0xb   :  { %242 = vmatpush1.bf16.msra.mxu0 %v2466_v11  ;;  %283 = vmatpush1.bf16.msra.mxu1 %v2467_v12  ;;  %v2496_v31 = vld [vmem:[%s3711_s1] ss:$16 sps:$4 sm:$0xff]   ;;  %v2497_v32 = vld [vmem:[%s3711_s1 + $0x8] ss:$16 sps:$4 sm:$0xff]  }
   0xc   :  { %243 = vmatprep.subr.bf16.mxu0 %v2468_v13  ;;  %284 = vmatprep.subr.bf16.mxu1 %v2470_v14  ;;  %v2500_v33 = vld [vmem:[%s3713_s3 + $0x18c] ss:$28 sps:$4 sm:$0xff]   ;;  %v22_v35 = vld [vmem:[%s3710_s0] sm:$0xf]  ;;  %v2506_v38 = vld [vmem:[%s3713_s3 + $0x154] ss:$28 sps:$4 sm:$0xff]  }
   0xd   :  { %v2503_v34 = vld [vmem:[%s3713_s3 + $0x50c] ss:$28 sps:$4 sm:$0xff]   ;;  %v2509_v39 = vld [vmem:[%s3713_s3 + $0x4d4] ss:$28 sps:$4 sm:$0xff]   ;;  %v2512_v42 = vld [vmem:[%s3713_s3 + $0x11c] ss:$28 sps:$4 sm:$0xff]  }
   0xe   :  { %v2498_v36 = vld [vmem:[%s3713_s3 + $0x188] ss:$28 sps:$4 sm:$0xff]   ;;  %v2504_v40 = vld [vmem:[%s3713_s3 + $0x150] ss:$28 sps:$4 sm:$0xff]   ;;  %v2515_v43 = vld [vmem:[%s3713_s3 + $0x49c] ss:$28 sps:$4 sm:$0xff]  }
   0xf   :  { %244 = vmatpush1.bf16.msra.mxu0 %v2472_v15  ;;  %285 = vmatpush1.bf16.msra.mxu1 %v2473_v16  ;;  %v2501_v37 = vld [vmem:[%s3713_s3 + $0x508] ss:$28 sps:$4 sm:$0xff]   ;;  %v2507_v41 = vld [vmem:[%s3713_s3 + $0x4d0] ss:$28 sps:$4 sm:$0xff]   ;;  %v2510_v44 = vld [vmem:[%s3713_s3 + $0x118] ss:$28 sps:$4 sm:$0xff]  }
  0x10   :  { %245 = vmatprep.subr.bf16.mxu0 %v2474_v17  ;;  %286 = vmatprep.subr.bf16.mxu1 %v2476_v18  ;;  %v2513_v45 = vld [vmem:[%s3713_s3 + $0x498] ss:$28 sps:$4 sm:$0xff]   ;;  %v2518_v46 = vld [vmem:[%s3713_s3 + $0xe4] ss:$28 sps:$4 sm:$0xff]   ;;  %v2524_v50 = vld [vmem:[%s3713_s3 + $0xac] ss:$28 sps:$4 sm:$0xff]  }
  0x11   :  { %v2521_v47 = vld [vmem:[%s3713_s3 + $0x464] ss:$28 sps:$4 sm:$0xff]   ;;  %v2527_v51 = vld [vmem:[%s3713_s3 + $0x42c] ss:$28 sps:$4 sm:$0xff]   ;;  %v2530_v54 = vld [vmem:[%s3713_s3 + $0x74] ss:$28 sps:$4 sm:$0xff]  }
  0x12   :  { %v2516_v48 = vld [vmem:[%s3713_s3 + $0xe0] ss:$28 sps:$4 sm:$0xff]   ;;  %v2522_v52 = vld [vmem:[%s3713_s3 + $0xa8] ss:$28 sps:$4 sm:$0xff]   ;;  %v2533_v55 = vld [vmem:[%s3713_s3 + $0x3f4] ss:$28 sps:$4 sm:$0xff]  }
  0x13   :  { %246 = vmatpush1.bf16.msra.mxu0 %v2478_v19  ;;  %287 = vmatpush1.bf16.msra.mxu1 %v2479_v20  ;;  %v2519_v49 = vld [vmem:[%s3713_s3 + $0x460] ss:$28 sps:$4 sm:$0xff]   ;;  %v2525_v53 = vld [vmem:[%s3713_s3 + $0x428] ss:$28 sps:$4 sm:$0xff]   ;;  %v2528_v56 = vld [vmem:[%s3713_s3 + $0x70] ss:$28 sps:$4 sm:$0xff]  }
  0x14   :  { %247 = vmatprep.subr.bf16.mxu0 %v2480_v21  ;;  %288 = vmatprep.subr.bf16.mxu1 %v2482_v22  ;;  %v2531_v57 = vld [vmem:[%s3713_s3 + $0x3f0] ss:$28 sps:$4 sm:$0xff]   ;;  %v2536_v58 = vld [vmem:[%s3713_s3 + $0x3c] ss:$28 sps:$4 sm:$0xff]   ;;  %v2542_v62 = vld [vmem:[%s3713_s3 + $0x4] ss:$28 sps:$4 sm:$0xff]  }
  0x15   :  { %v2539_v59 = vld [vmem:[%s3713_s3 + $0x3bc] ss:$28 sps:$4 sm:$0xff]   ;;  %v2545_v63 = vld [vmem:[%s3713_s3 + $0x384] ss:$28 sps:$4 sm:$0xff]   ;;  %v2548_v2 = vld [vmem:[%s3713_s3 + $0x34c] ss:$28 sps:$4 sm:$0xff]  }
  0x16   :  { %v2534_v60 = vld [vmem:[%s3713_s3 + $0x38] ss:$28 sps:$4 sm:$0xff]   ;;  %v2540_v0 = vld [vmem:[%s3713_s3] ss:$28 sps:$4 sm:$0xff]   ;;  %v2551_v3 = vld [vmem:[%s3713_s3 + $0x6cc] ss:$28 sps:$4 sm:$0xff]  }
  0x17   :  { %248 = vmatpush1.bf16.msra.mxu0 %v2484_v23  ;;  %289 = vmatpush1.bf16.msra.mxu1 %v2485_v24  ;;  %v2537_v61 = vld [vmem:[%s3713_s3 + $0x3b8] ss:$28 sps:$4 sm:$0xff]   ;;  %v2543_v1 = vld [vmem:[%s3713_s3 + $0x380] ss:$28 sps:$4 sm:$0xff]   ;;  %v2546_v4 = vld [vmem:[%s3713_s3 + $0x348] ss:$28 sps:$4 sm:$0xff]  }
  0x18   :  { %249 = vmatprep.subr.bf16.mxu0 %v2486_v25  ;;  %290 = vmatprep.subr.bf16.mxu1 %v2488_v26  ;;  %v2549_v5 = vld [vmem:[%s3713_s3 + $0x6c8] ss:$28 sps:$4 sm:$0xff]   ;;  %v2554_v6 = vld [vmem:[%s3713_s3 + $0x314] ss:$28 sps:$4 sm:$0xff]   ;;  %v2560_v10 = vld [vmem:[%s3713_s3 + $0x2dc] ss:$28 sps:$4 sm:$0xff]  }
  0x19   :  { %v2557_v7 = vld [vmem:[%s3713_s3 + $0x694] ss:$28 sps:$4 sm:$0xff]   ;;  %v2563_v11 = vld [vmem:[%s3713_s3 + $0x65c] ss:$28 sps:$4 sm:$0xff]   ;;  %v2566_v14 = vld [vmem:[%s3713_s3 + $0x2a4] ss:$28 sps:$4 sm:$0xff]  }
  0x1a   :  { %v2552_v8 = vld [vmem:[%s3713_s3 + $0x310] ss:$28 sps:$4 sm:$0xff]   ;;  %v2558_v12 = vld [vmem:[%s3713_s3 + $0x2d8] ss:$28 sps:$4 sm:$0xff]   ;;  %v2569_v15 = vld [vmem:[%s3713_s3 + $0x624] ss:$28 sps:$4 sm:$0xff]  }
  0x1b   :  { %250 = vmatpush1.bf16.msra.mxu0 %v2490_v27  ;;  %291 = vmatpush1.bf16.msra.mxu1 %v2491_v28  ;;  %v2555_v9 = vld [vmem:[%s3713_s3 + $0x690] ss:$28 sps:$4 sm:$0xff]   ;;  %v2561_v13 = vld [vmem:[%s3713_s3 + $0x658] ss:$28 sps:$4 sm:$0xff]   ;;  %v2564_v16 = vld [vmem:[%s3713_s3 + $0x2a0] ss:$28 sps:$4 sm:$0xff]  }
  0x1c   :  { %251 = vmatprep.subr.bf16.mxu0 %v2492_v29  ;;  %292 = vmatprep.subr.bf16.mxu1 %v2494_v30  ;;  %v2567_v17 = vld [vmem:[%s3713_s3 + $0x620] ss:$28 sps:$4 sm:$0xff]   ;;  %v2572_v18 = vld [vmem:[%s3713_s3 + $0x26c] ss:$28 sps:$4 sm:$0xff]   ;;  %v2578_v22 = vld [vmem:[%s3713_s3 + $0x234] ss:$28 sps:$4 sm:$0xff]  }
  0x1d   :  { %v2575_v19 = vld [vmem:[%s3713_s3 + $0x5ec] ss:$28 sps:$4 sm:$0xff]   ;;  %v2581_v23 = vld [vmem:[%s3713_s3 + $0x5b4] ss:$28 sps:$4 sm:$0xff]   ;;  %v2584_v26 = vld [vmem:[%s3713_s3 + $0x1fc] ss:$28 sps:$4 sm:$0xff]  }
  0x1e   :  { %v2570_v20 = vld [vmem:[%s3713_s3 + $0x268] ss:$28 sps:$4 sm:$0xff]   ;;  %v2576_v24 = vld [vmem:[%s3713_s3 + $0x230] ss:$28 sps:$4 sm:$0xff]   ;;  %v2587_v27 = vld [vmem:[%s3713_s3 + $0x57c] ss:$28 sps:$4 sm:$0xff]  }
  0x1f   :  { %252 = vmatpush1.bf16.msra.mxu0 %v2496_v31  ;;  %293 = vmatpush1.bf16.msra.mxu1 %v2497_v32  ;;  %v2573_v21 = vld [vmem:[%s3713_s3 + $0x5e8] ss:$28 sps:$4 sm:$0xff]   ;;  %v2579_v25 = vld [vmem:[%s3713_s3 + $0x5b0] ss:$28 sps:$4 sm:$0xff]   ;;  %v2582_v28 = vld [vmem:[%s3713_s3 + $0x1f8] ss:$28 sps:$4 sm:$0xff]  }
  0x20   :  { %1780 = vmatprep.subr.bf16.mxu0 %v2500_v33  ;;  %1821 = vmatprep.subr.bf16.mxu1 %v2503_v34  ;;  %v2585_v29 = vld [vmem:[%s3713_s3 + $0x578] ss:$28 sps:$4 sm:$0xff]   ;;  %v2590_v30 = vld [vmem:[%s3713_s3 + $0x1c4] ss:$28 sps:$4 sm:$0xff]  }
  0x21   :  { %v2593_v31 = vld [vmem:[%s3713_s3 + $0x544] ss:$28 sps:$4 sm:$0xff]   ;;  %v2596_v34 = vld [vmem:[%s3713_s3 + $0x194] ss:$28 sps:$4 sm:$0xff]  }
  0x22   :  { %270 = vmatmul.mubr.bf16.vlgmr.msra.gmra.mxu0 %v22_v35  ;;  %311 = vmatmul.mubr.bf16.vlgmr.msra.gmra.mxu1 %v22_v35  ;;  %v2588_v32 = vld [vmem:[%s3713_s3 + $0x1c0] ss:$28 sps:$4 sm:$0xff]   ;;  %v2599_v35 = vld [vmem:[%s3713_s3 + $0x514] ss:$28 sps:$4 sm:$0xff]  }
  0x23   :  { %1781 = vmatpush1.bf16.msra.mxu0 %v2498_v36  ;;  %1822 = vmatpush1.bf16.msra.mxu1 %v2501_v37  ;;  %v2591_v33 = vld [vmem:[%s3713_s3 + $0x540] ss:$28 sps:$4 sm:$0xff]  }
  0x24   :  { %1782 = vmatprep.subr.bf16.mxu0 %v2506_v38  ;;  %1823 = vmatprep.subr.bf16.mxu1 %v2509_v39 }
  0x27   :  { %1783 = vmatpush1.bf16.msra.mxu0 %v2504_v40  ;;  %1824 = vmatpush1.bf16.msra.mxu1 %v2507_v41 }
  0x28   :  { %1784 = vmatprep.subr.bf16.mxu0 %v2512_v42  ;;  %1825 = vmatprep.subr.bf16.mxu1 %v2515_v43 }
  0x2b   :  { %1785 = vmatpush1.bf16.msra.mxu0 %v2510_v44  ;;  %1826 = vmatpush1.bf16.msra.mxu1 %v2513_v45 }
  0x2c   :  { %1786 = vmatprep.subr.bf16.mxu0 %v2518_v46  ;;  %1827 = vmatprep.subr.bf16.mxu1 %v2521_v47 }
  0x2f   :  { %1787 = vmatpush1.bf16.msra.mxu0 %v2516_v48  ;;  %1828 = vmatpush1.bf16.msra.mxu1 %v2519_v49 }
  0x30   :  { %1788 = vmatprep.subr.bf16.mxu0 %v2524_v50  ;;  %1829 = vmatprep.subr.bf16.mxu1 %v2527_v51 }
  0x33   :  { %1789 = vmatpush1.bf16.msra.mxu0 %v2522_v52  ;;  %1830 = vmatpush1.bf16.msra.mxu1 %v2525_v53 }
  0x34   :  { %1790 = vmatprep.subr.bf16.mxu0 %v2530_v54  ;;  %1831 = vmatprep.subr.bf16.mxu1 %v2533_v55 }
  0x37   :  { %1791 = vmatpush1.bf16.msra.mxu0 %v2528_v56  ;;  %1832 = vmatpush1.bf16.msra.mxu1 %v2531_v57 }
  0x38   :  { %1792 = vmatprep.subr.bf16.mxu0 %v2536_v58  ;;  %1833 = vmatprep.subr.bf16.mxu1 %v2539_v59 }
  0x3b   :  { %1793 = vmatpush1.bf16.msra.mxu0 %v2534_v60  ;;  %1834 = vmatpush1.bf16.msra.mxu1 %v2537_v61 }
  0x3c   :  { %1794 = vmatprep.subr.bf16.mxu0 %v2542_v62  ;;  %1835 = vmatprep.subr.bf16.mxu1 %v2545_v63 }
  0x3f   :  { %1795 = vmatpush1.bf16.msra.mxu0 %v2540_v0  ;;  %1836 = vmatpush1.bf16.msra.mxu1 %v2543_v1 }
  0x40   :  { %1796 = vmatprep.subr.bf16.mxu0 %v2548_v2  ;;  %1837 = vmatprep.subr.bf16.mxu1 %v2551_v3 }
  0x43   :  { %1797 = vmatpush2.bf16.msra.mxu0 %v2546_v4  ;;  %1838 = vmatpush2.bf16.msra.mxu1 %v2549_v5 }
  0x44   :  { %1798 = vmatprep.subr.bf16.mxu0 %v2554_v6  ;;  %1839 = vmatprep.subr.bf16.mxu1 %v2557_v7 }
  0x47   :  { %1799 = vmatpush2.bf16.msra.mxu0 %v2552_v8  ;;  %1840 = vmatpush2.bf16.msra.mxu1 %v2555_v9 }
  0x48   :  { %1800 = vmatprep.subr.bf16.mxu0 %v2560_v10  ;;  %1841 = vmatprep.subr.bf16.mxu1 %v2563_v11 }
  0x4b   :  { %1801 = vmatpush2.bf16.msra.mxu0 %v2558_v12  ;;  %1842 = vmatpush2.bf16.msra.mxu1 %v2561_v13 }
  0x4c   :  { %1802 = vmatprep.subr.bf16.mxu0 %v2566_v14  ;;  %1843 = vmatprep.subr.bf16.mxu1 %v2569_v15 }
  0x4f   :  { %1803 = vmatpush2.bf16.msra.mxu0 %v2564_v16  ;;  %1844 = vmatpush2.bf16.msra.mxu1 %v2567_v17 }
  0x50   :  { %1804 = vmatprep.subr.bf16.mxu0 %v2572_v18  ;;  %1845 = vmatprep.subr.bf16.mxu1 %v2575_v19 }
  0x53   :  { %1805 = vmatpush2.bf16.msra.mxu0 %v2570_v20  ;;  %1846 = vmatpush2.bf16.msra.mxu1 %v2573_v21 }
  0x54   :  { %1806 = vmatprep.subr.bf16.mxu0 %v2578_v22  ;;  %1847 = vmatprep.subr.bf16.mxu1 %v2581_v23 }
  0x57   :  { %1807 = vmatpush2.bf16.msra.mxu0 %v2576_v24  ;;  %1848 = vmatpush2.bf16.msra.mxu1 %v2579_v25 }
  0x58   :  { %1808 = vmatprep.subr.bf16.mxu0 %v2584_v26  ;;  %1849 = vmatprep.subr.bf16.mxu1 %v2587_v27 }
  0x5b   :  { %1809 = vmatpush2.bf16.msra.mxu0 %v2582_v28  ;;  %1850 = vmatpush2.bf16.msra.mxu1 %v2585_v29 }
  0x5c   :  { %1810 = vmatprep.subr.bf16.mxu0 %v2590_v30  ;;  %1851 = vmatprep.subr.bf16.mxu1 %v2593_v31 }
  0x5f   :  { %1811 = vmatpush2.bf16.msra.mxu0 %v2588_v32  ;;  %1852 = vmatpush2.bf16.msra.mxu1 %v2591_v33 }
  0x60   :  { %1862 = vmatprep.subr.bf16.mxu0 %v2596_v34  ;;  %1903 = vmatprep.subr.bf16.mxu1 %v2599_v35 }
  0x61   :  { %10 = vsyncpa [#allocation3], 0  ;;  %v57_v36 = vlaneseq  ;;  %v55_v40 = vld [vmem:[%s3712_s2] sm:$0xf]  ;;  %v2594_v4 = vld [vmem:[%s3713_s3 + $0x190] ss:$28 sps:$4 sm:$0xff]  }
  0x62   :  { %v2597_v7 = vld [vmem:[%s3713_s3 + $0x510] ss:$28 sps:$4 sm:$0xff]   ;;  %v2602_v9 = vld [vmem:[%s3713_s3 + $0x15c] ss:$28 sps:$4 sm:$0xff]   ;;  %v2608_v13 = vld [vmem:[%s3713_s3 + $0x124] ss:$28 sps:$4 sm:$0xff]  }
  0x63   :  { %v3169_v37 = vshrl.u32 %v57_v36, 7  ;;  %v2605_v10 = vld [vmem:[%s3713_s3 + $0x4dc] ss:$28 sps:$4 sm:$0xff]   ;;  %v2611_v14 = vld [vmem:[%s3713_s3 + $0x4a4] ss:$28 sps:$4 sm:$0xff]  }
  0x64   :  { %v2600_v11 = vld [vmem:[%s3713_s3 + $0x158] ss:$28 sps:$4 sm:$0xff]   ;;  %v2606_v15 = vld [vmem:[%s3713_s3 + $0x120] ss:$28 sps:$4 sm:$0xff]   ;;  %v2614_v17 = vld [vmem:[%s3713_s3 + $0xec] ss:$28 sps:$4 sm:$0xff]  }
  0x65   :  { %v59_v38 = vsub.s32 0, %v3169_v37  ;;  %v67_v39 = vsub.s32 2, %v3169_v37  ;;  %v63_v41 = vsub.s32 1, %v3169_v37  ;;  %v71_v42 = vsub.s32 3, %v3169_v37  ;;  %v2603_v12 = vld [vmem:[%s3713_s3 + $0x4d8] ss:$28 sps:$4 sm:$0xff]  }
  0x66   :  { %v2609_v16 = vld [vmem:[%s3713_s3 + $0x4a0] ss:$28 sps:$4 sm:$0xff]   ;;  %v2617_v18 = vld [vmem:[%s3713_s3 + $0x46c] ss:$28 sps:$4 sm:$0xff]   ;;  %v2620_v21 = vld [vmem:[%s3713_s3 + $0xb4] ss:$28 sps:$4 sm:$0xff]  }
  0x67   :  { %v60_v43 = vrot.slane %v55_v40, %v59_v38  ;;  %v68_v44 = vrot.slane %v55_v40, %v67_v39  ;;  %v64_v47 = vrot.slane %v55_v40, %v63_v41  ;;  %v72_v48 = vrot.slane %v55_v40, %v71_v42  ;;  %v2612_v19 = vld [vmem:[%s3713_s3 + $0xe8] ss:$28 sps:$4 sm:$0xff]   ;;  %v2623_v22 = vld [vmem:[%s3713_s3 + $0x434] ss:$28 sps:$4 sm:$0xff]   ;;  %v2626_v25 = vld [vmem:[%s3713_s3 + $0x7c] ss:$28 sps:$4 sm:$0xff]  }
  0x68   :  { %v2615_v20 = vld [vmem:[%s3713_s3 + $0x468] ss:$28 sps:$4 sm:$0xff]   ;;  %v2618_v23 = vld [vmem:[%s3713_s3 + $0xb0] ss:$28 sps:$4 sm:$0xff]   ;;  %v2629_v26 = vld [vmem:[%s3713_s3 + $0x3fc] ss:$28 sps:$4 sm:$0xff]  }
  0x69   :  { %v2621_v24 = vld [vmem:[%s3713_s3 + $0x430] ss:$28 sps:$4 sm:$0xff]   ;;  %v2624_v27 = vld [vmem:[%s3713_s3 + $0x78] ss:$28 sps:$4 sm:$0xff]   ;;  %v2632_v29 = vld [vmem:[%s3713_s3 + $0x44] ss:$28 sps:$4 sm:$0xff]  }
  0x6a   :  { %v2627_v28 = vld [vmem:[%s3713_s3 + $0x3f8] ss:$28 sps:$4 sm:$0xff]   ;;  %v2635_v30 = vld [vmem:[%s3713_s3 + $0x3c4] ss:$28 sps:$4 sm:$0xff]   ;;  %v2638_v33 = vld [vmem:[%s3713_s3 + $0xc] ss:$28 sps:$4 sm:$0xff]  }
  0x6b   :  { %v2630_v31 = vld [vmem:[%s3713_s3 + $0x40] ss:$28 sps:$4 sm:$0xff]   ;;  %v2641_v34 = vld [vmem:[%s3713_s3 + $0x38c] ss:$28 sps:$4 sm:$0xff]   ;;  %v2644_v40 = vld [vmem:[%s3713_s3 + $0x354] ss:$28 sps:$4 sm:$0xff]  }
  0x6c   :  { %v2633_v32 = vld [vmem:[%s3713_s3 + $0x3c0] ss:$28 sps:$4 sm:$0xff]   ;;  %v2636_v35 = vld [vmem:[%s3713_s3 + $0x8] ss:$28 sps:$4 sm:$0xff]  }
  0x6d   :  { %v2639_v36 = vld [vmem:[%s3713_s3 + $0x388] ss:$28 sps:$4 sm:$0xff]  }
  0xe2   :  { %v271_v45 = vpop.f32.mrf.mxu0  ;;  %v312_v46 = vpop.f32.mrf.mxu1 }
  0xe3   :  { %v272_v49 = vadd.f32 %v271_v45, %v60_v43  ;;  %v313_v50 = vadd.f32 %v312_v46, %v68_v44  ;;  %v2647_v43 = vld [vmem:[%s3713_s3 + $0x6d4] ss:$28 sps:$4 sm:$0xff]   ;;  %v2650_v46 = vld [vmem:[%s3713_s3 + $0x31c] ss:$28 sps:$4 sm:$0xff]  }
  0xe4   :  { %v273_v51 = vpop.f32.mrf.mxu0  ;;  %v314_v52 = vpop.f32.mrf.mxu1  ;;  %v2642_v44 = vld [vmem:[%s3713_s3 + $0x350] ss:$28 sps:$4 sm:$0xff]  }
  0xe5   :  { %v323_v53 = vmul.f32 0.01, %v272_v49  ;;  %vm319_vm0 = vcmp.gt.f32.partialorder %v272_v49, 0.0  ;;  %v325_v54 = vmul.f32 0.01, %v313_v50  ;;  %v274_v55 = vadd.f32 %v273_v51, %v64_v47 }
  0xe6   :  { %v315_v56 = vadd.f32 %v314_v52, %v72_v48  ;;  %v275_v57 = vpop.f32.mrf.mxu0  ;;  %v316_v58 = vpop.f32.mrf.mxu1  ;;  %vm321_vm1 = vcmp.gt.f32.partialorder %v313_v50, 0.0  ;;  %v2645_v45 = vld [vmem:[%s3713_s3 + $0x6d0] ss:$28 sps:$4 sm:$0xff]   ;;  %v2653_v47 = vld [vmem:[%s3713_s3 + $0x69c] ss:$28 sps:$4 sm:$0xff]  }
  0xe7   :  { %vm320_vm2 = vcmp.gt.f32.partialorder %v274_v55, 0.0  ;;  %v324_v59 = vmul.f32 0.01, %v274_v55  ;;  %v327_v62 = vsel %vm319_vm0, %v272_v49, %v323_v53  ;;  %v329_v0 = vsel %vm321_vm1, %v313_v50, %v325_v54  ;;  %v2648_v48 = vld [vmem:[%s3713_s3 + $0x318] ss:$28 sps:$4 sm:$0xff]  }
  0xe8   :  { %v276_v60 = vpop.f32.mrf.mxu0  ;;  %v317_v61 = vpop.f32.mrf.mxu1  ;;  %vm322_vm3 = vcmp.gt.f32.partialorder %v315_v56, 0.0  ;;  %v326_v63 = vmul.f32 0.01, %v315_v56  ;;  %v3191_v5 = vpack.c.bf16 %v327_v62, %v327_v62  ;;  %v3198_v8 = vpack.c.bf16 %v329_v0, %v329_v0  ;;  %v2651_v49 = vld [vmem:[%s3713_s3 + $0x698] ss:$28 sps:$4 sm:$0xff]  }
  0xe9   :  { %v328_v1 = vsel %vm320_vm2, %v274_v55, %v324_v59  ;;  %v2656_v50 = vld [vmem:[%s3713_s3 + $0x2e4] ss:$28 sps:$4 sm:$0xff]   ;;  %v2662_v54 = vld [vmem:[%s3713_s3 + $0x2ac] ss:$28 sps:$4 sm:$0xff]   ;;  %v2668_v58 = vld [vmem:[%s3713_s3 + $0x274] ss:$28 sps:$4 sm:$0xff]  }
  0xea   :  { %v3186_v2 = vpack.c.bf16 %v328_v1, %v328_v1  ;;  %v330_v3 = vsel %vm322_vm3, %v315_v56, %v326_v63  ;;  %v2659_v51 = vld [vmem:[%s3713_s3 + $0x664] ss:$28 sps:$4 sm:$0xff]   ;;  %v2665_v55 = vld [vmem:[%s3713_s3 + $0x62c] ss:$28 sps:$4 sm:$0xff]   ;;  %v2671_v59 = vld [vmem:[%s3713_s3 + $0x5f4] ss:$28 sps:$4 sm:$0xff]  }
  0xeb   :  { %v3193_v6 = vpack.c.bf16 %v330_v3, %v330_v3  ;;  %v2654_v52 = vld [vmem:[%s3713_s3 + $0x2e0] ss:$28 sps:$4 sm:$0xff]   ;;  %v2660_v56 = vld [vmem:[%s3713_s3 + $0x2a8] ss:$28 sps:$4 sm:$0xff]   ;;  %v2666_v60 = vld [vmem:[%s3713_s3 + $0x270] ss:$28 sps:$4 sm:$0xff]  }
  0xec   :  { %1812 = vmatprep.mubr.bf16.mxu0 %v3186_v2  ;;  %v2657_v53 = vld [vmem:[%s3713_s3 + $0x660] ss:$28 sps:$4 sm:$0xff]   ;;  %v2663_v57 = vld [vmem:[%s3713_s3 + $0x628] ss:$28 sps:$4 sm:$0xff]   ;;  %v2669_v61 = vld [vmem:[%s3713_s3 + $0x5f0] ss:$28 sps:$4 sm:$0xff]  }
  0xed   :  { %1853 = vmatprep.mubr.bf16.mxu1 %v3193_v6  ;;  %1813 = vmatmul.mubr.bf16.vlgmr.msra.gmra.mxu0 %v3191_v5  ;;  %v2674_v62 = vld [vmem:[%s3713_s3 + $0x23c] ss:$28 sps:$4 sm:$0xff]   ;;  %v2680_v3 = vld [vmem:[%s3713_s3 + $0x204] ss:$28 sps:$4 sm:$0xff]  }
  0xee   :  { %1854 = vmatmul.mubr.bf16.vlgmr.msra.gmra.mxu1 %v3198_v8  ;;  %1863 = vmatpush1.bf16.msra.mxu0 %v2594_v4  ;;  %v2677_v63 = vld [vmem:[%s3713_s3 + $0x5bc] ss:$28 sps:$4 sm:$0xff]   ;;  %v2683_v4 = vld [vmem:[%s3713_s3 + $0x584] ss:$28 sps:$4 sm:$0xff]  }
  0xef   :  { %1904 = vmatpush1.bf16.msra.mxu1 %v2597_v7  ;;  %1894 = vmatprep.mubr.bf16.mxu0 %v3186_v2  ;;  %v2672_v0 = vld [vmem:[%s3713_s3 + $0x238] ss:$28 sps:$4 sm:$0xff]   ;;  %v2678_v7 = vld [vmem:[%s3713_s3 + $0x200] ss:$28 sps:$4 sm:$0xff]  }
  0xf0   :  { %1935 = vmatprep.mubr.bf16.mxu1 %v3193_v6  ;;  %1864 = vmatprep.subr.bf16.mxu0 %v2602_v9  ;;  %v2675_v1 = vld [vmem:[%s3713_s3 + $0x5b8] ss:$28 sps:$4 sm:$0xff]   ;;  %v2681_v9 = vld [vmem:[%s3713_s3 + $0x580] ss:$28 sps:$4 sm:$0xff]  }
  0xf1   :  { %1905 = vmatprep.subr.bf16.mxu1 %v2605_v10  ;;  %v2686_v10 = vld [vmem:[%s3713_s3 + $0x1cc] ss:$28 sps:$4 sm:$0xff]  }
  0xf2   :  { %1865 = vmatpush1.bf16.msra.mxu0 %v2600_v11  ;;  %v2689_v11 = vld [vmem:[%s3713_s3 + $0x54c] ss:$28 sps:$4 sm:$0xff]  }
  0xf3   :  { %1906 = vmatpush1.bf16.msra.mxu1 %v2603_v12  ;;  %1866 = vmatprep.subr.bf16.mxu0 %v2608_v13  ;;  %v2684_v12 = vld [vmem:[%s3713_s3 + $0x1c8] ss:$28 sps:$4 sm:$0xff]  }
  0xf4   :  { %1907 = vmatprep.subr.bf16.mxu1 %v2611_v14  ;;  %v2687_v13 = vld [vmem:[%s3713_s3 + $0x548] ss:$28 sps:$4 sm:$0xff]   ;;  %v2692_v14 = vld [vmem:[%s3713_s3 + $0x19c] ss:$28 sps:$4 sm:$0xff]  }
  0xf6   :  { %1867 = vmatpush1.bf16.msra.mxu0 %v2606_v15  ;;  %v2695_v15 = vld [vmem:[%s3713_s3 + $0x51c] ss:$28 sps:$4 sm:$0xff]  }
  0xf7   :  { %1908 = vmatpush1.bf16.msra.mxu1 %v2609_v16  ;;  %1868 = vmatprep.subr.bf16.mxu0 %v2614_v17  ;;  %v2690_v16 = vld [vmem:[%s3713_s3 + $0x198] ss:$28 sps:$4 sm:$0xff]  }
  0xf8   :  { %1909 = vmatprep.subr.bf16.mxu1 %v2617_v18  ;;  %v2693_v17 = vld [vmem:[%s3713_s3 + $0x518] ss:$28 sps:$4 sm:$0xff]   ;;  %v2698_v18 = vld [vmem:[%s3713_s3 + $0x164] ss:$28 sps:$4 sm:$0xff]  }
  0xfa   :  { %1869 = vmatpush1.bf16.msra.mxu0 %v2612_v19  ;;  %v2701_v19 = vld [vmem:[%s3713_s3 + $0x4e4] ss:$28 sps:$4 sm:$0xff]  }
  0xfb   :  { %1910 = vmatpush1.bf16.msra.mxu1 %v2615_v20  ;;  %1870 = vmatprep.subr.bf16.mxu0 %v2620_v21  ;;  %v2696_v20 = vld [vmem:[%s3713_s3 + $0x160] ss:$28 sps:$4 sm:$0xff]  }
  0xfc   :  { %1911 = vmatprep.subr.bf16.mxu1 %v2623_v22  ;;  %v2699_v21 = vld [vmem:[%s3713_s3 + $0x4e0] ss:$28 sps:$4 sm:$0xff]   ;;  %v2704_v22 = vld [vmem:[%s3713_s3 + $0x12c] ss:$28 sps:$4 sm:$0xff]  }
  0xfe   :  { %1871 = vmatpush1.bf16.msra.mxu0 %v2618_v23  ;;  %v2707_v23 = vld [vmem:[%s3713_s3 + $0x4ac] ss:$28 sps:$4 sm:$0xff]  }
  0xff   :  { %1912 = vmatpush1.bf16.msra.mxu1 %v2621_v24  ;;  %1872 = vmatprep.subr.bf16.mxu0 %v2626_v25  ;;  %v2702_v24 = vld [vmem:[%s3713_s3 + $0x128] ss:$28 sps:$4 sm:$0xff]  }
 0x100   :  { %1913 = vmatprep.subr.bf16.mxu1 %v2629_v26  ;;  %v2705_v25 = vld [vmem:[%s3713_s3 + $0x4a8] ss:$28 sps:$4 sm:$0xff]   ;;  %v2710_v26 = vld [vmem:[%s3713_s3 + $0xf4] ss:$28 sps:$4 sm:$0xff]  }
 0x102   :  { %1873 = vmatpush1.bf16.msra.mxu0 %v2624_v27  ;;  %v2713_v27 = vld [vmem:[%s3713_s3 + $0x474] ss:$28 sps:$4 sm:$0xff]  }
 0x103   :  { %1914 = vmatpush1.bf16.msra.mxu1 %v2627_v28  ;;  %1874 = vmatprep.subr.bf16.mxu0 %v2632_v29  ;;  %v2708_v28 = vld [vmem:[%s3713_s3 + $0xf0] ss:$28 sps:$4 sm:$0xff]  }
 0x104   :  { %1915 = vmatprep.subr.bf16.mxu1 %v2635_v30  ;;  %v2711_v29 = vld [vmem:[%s3713_s3 + $0x470] ss:$28 sps:$4 sm:$0xff]   ;;  %v2716_v30 = vld [vmem:[%s3713_s3 + $0xbc] ss:$28 sps:$4 sm:$0xff]  }
 0x106   :  { %1875 = vmatpush1.bf16.msra.mxu0 %v2630_v31  ;;  %v2719_v31 = vld [vmem:[%s3713_s3 + $0x43c] ss:$28 sps:$4 sm:$0xff]  }
 0x107   :  { %1916 = vmatpush1.bf16.msra.mxu1 %v2633_v32  ;;  %1876 = vmatprep.subr.bf16.mxu0 %v2638_v33  ;;  %v2714_v32 = vld [vmem:[%s3713_s3 + $0xb8] ss:$28 sps:$4 sm:$0xff]  }
 0x108   :  { %1917 = vmatprep.subr.bf16.mxu1 %v2641_v34  ;;  %v2717_v33 = vld [vmem:[%s3713_s3 + $0x438] ss:$28 sps:$4 sm:$0xff]   ;;  %v2722_v34 = vld [vmem:[%s3713_s3 + $0x84] ss:$28 sps:$4 sm:$0xff]  }
 0x10a   :  { %1877 = vmatpush1.bf16.msra.mxu0 %v2636_v35  ;;  %v2725_v35 = vld [vmem:[%s3713_s3 + $0x404] ss:$28 sps:$4 sm:$0xff]  }
 0x10b   :  { %1918 = vmatpush1.bf16.msra.mxu1 %v2639_v36  ;;  %1878 = vmatprep.subr.bf16.mxu0 %v2644_v40  ;;  %v2720_v36 = vld [vmem:[%s3713_s3 + $0x80] ss:$28 sps:$4 sm:$0xff]  }
 0x10c   :  { %1919 = vmatprep.subr.bf16.mxu1 %v2647_v43  ;;  %v2723_v40 = vld [vmem:[%s3713_s3 + $0x400] ss:$28 sps:$4 sm:$0xff]   ;;  %v2728_v43 = vld [vmem:[%s3713_s3 + $0x4c] ss:$28 sps:$4 sm:$0xff]  }
 0x10e   :  { %1879 = vmatpush2.bf16.msra.mxu0 %v2642_v44  ;;  %v2731_v44 = vld [vmem:[%s3713_s3 + $0x3cc] ss:$28 sps:$4 sm:$0xff]  }
 0x10f   :  { %1920 = vmatpush2.bf16.msra.mxu1 %v2645_v45  ;;  %1880 = vmatprep.subr.bf16.mxu0 %v2650_v46  ;;  %v2726_v45 = vld [vmem:[%s3713_s3 + $0x48] ss:$28 sps:$4 sm:$0xff]  }
 0x110   :  { %1921 = vmatprep.subr.bf16.mxu1 %v2653_v47  ;;  %v2729_v46 = vld [vmem:[%s3713_s3 + $0x3c8] ss:$28 sps:$4 sm:$0xff]   ;;  %v2734_v47 = vld [vmem:[%s3713_s3 + $0x14] ss:$28 sps:$4 sm:$0xff]  }
 0x112   :  { %1881 = vmatpush2.bf16.msra.mxu0 %v2648_v48  ;;  %v2737_v48 = vld [vmem:[%s3713_s3 + $0x394] ss:$28 sps:$4 sm:$0xff]  }
 0x113   :  { %1922 = vmatpush2.bf16.msra.mxu1 %v2651_v49  ;;  %1882 = vmatprep.subr.bf16.mxu0 %v2656_v50  ;;  %v2732_v49 = vld [vmem:[%s3713_s3 + $0x10] ss:$28 sps:$4 sm:$0xff]  }
 0x114   :  { %1923 = vmatprep.subr.bf16.mxu1 %v2659_v51  ;;  %v2735_v50 = vld [vmem:[%s3713_s3 + $0x390] ss:$28 sps:$4 sm:$0xff]   ;;  %v2740_v51 = vld [vmem:[%s3713_s3 + $0x35c] ss:$28 sps:$4 sm:$0xff]  }
 0x116   :  { %1883 = vmatpush2.bf16.msra.mxu0 %v2654_v52  ;;  %v2743_v52 = vld [vmem:[%s3713_s3 + $0x6dc] ss:$28 sps:$4 sm:$0xff]  }
 0x117   :  { %1924 = vmatpush2.bf16.msra.mxu1 %v2657_v53  ;;  %1884 = vmatprep.subr.bf16.mxu0 %v2662_v54  ;;  %v2738_v53 = vld [vmem:[%s3713_s3 + $0x358] ss:$28 sps:$4 sm:$0xff]  }
 0x118   :  { %1925 = vmatprep.subr.bf16.mxu1 %v2665_v55  ;;  %v2741_v54 = vld [vmem:[%s3713_s3 + $0x6d8] ss:$28 sps:$4 sm:$0xff]   ;;  %v2746_v55 = vld [vmem:[%s3713_s3 + $0x324] ss:$28 sps:$4 sm:$0xff]  }
 0x11a   :  { %1885 = vmatpush2.bf16.msra.mxu0 %v2660_v56  ;;  %v2749_v56 = vld [vmem:[%s3713_s3 + $0x6a4] ss:$28 sps:$4 sm:$0xff]  }
 0x11b   :  { %1926 = vmatpush2.bf16.msra.mxu1 %v2663_v57  ;;  %1886 = vmatprep.subr.bf16.mxu0 %v2668_v58  ;;  %v2744_v57 = vld [vmem:[%s3713_s3 + $0x320] ss:$28 sps:$4 sm:$0xff]  }
 0x11c   :  { %1927 = vmatprep.subr.bf16.mxu1 %v2671_v59  ;;  %v2747_v58 = vld [vmem:[%s3713_s3 + $0x6a0] ss:$28 sps:$4 sm:$0xff]   ;;  %v2752_v59 = vld [vmem:[%s3713_s3 + $0x2ec] ss:$28 sps:$4 sm:$0xff]  }
 0x11e   :  { %1887 = vmatpush2.bf16.msra.mxu0 %v2666_v60  ;;  %v2755_v60 = vld [vmem:[%s3713_s3 + $0x66c] ss:$28 sps:$4 sm:$0xff]  }
 0x11f   :  { %1928 = vmatpush2.bf16.msra.mxu1 %v2669_v61  ;;  %1888 = vmatprep.subr.bf16.mxu0 %v2674_v62  ;;  %v2750_v61 = vld [vmem:[%s3713_s3 + $0x2e8] ss:$28 sps:$4 sm:$0xff]  }
 0x120   :  { %1929 = vmatprep.subr.bf16.mxu1 %v2677_v63  ;;  %v2753_v62 = vld [vmem:[%s3713_s3 + $0x668] ss:$28 sps:$4 sm:$0xff]   ;;  %v2758_v63 = vld [vmem:[%s3713_s3 + $0x2b4] ss:$28 sps:$4 sm:$0xff]  }
 0x122   :  { %1889 = vmatpush2.bf16.msra.mxu0 %v2672_v0  ;;  %v2761_v0 = vld [vmem:[%s3713_s3 + $0x634] ss:$28 sps:$4 sm:$0xff]  }
 0x123   :  { %1930 = vmatpush2.bf16.msra.mxu1 %v2675_v1  ;;  %1890 = vmatprep.subr.bf16.mxu0 %v2680_v3  ;;  %v2756_v1 = vld [vmem:[%s3713_s3 + $0x2b0] ss:$28 sps:$4 sm:$0xff]  }
 0x124   :  { %1931 = vmatprep.subr.bf16.mxu1 %v2683_v4  ;;  %v2759_v3 = vld [vmem:[%s3713_s3 + $0x630] ss:$28 sps:$4 sm:$0xff]   ;;  %v2764_v4 = vld [vmem:[%s3713_s3 + $0x27c] ss:$28 sps:$4 sm:$0xff]  }
 0x126   :  { %1891 = vmatpush2.bf16.msra.mxu0 %v2678_v7  ;;  %v2767_v7 = vld [vmem:[%s3713_s3 + $0x5fc] ss:$28 sps:$4 sm:$0xff]  }
 0x127   :  { %1932 = vmatpush2.bf16.msra.mxu1 %v2681_v9  ;;  %1892 = vmatprep.subr.bf16.mxu0 %v2686_v10  ;;  %v2762_v9 = vld [vmem:[%s3713_s3 + $0x278] ss:$28 sps:$4 sm:$0xff]  }
 0x128   :  { %1933 = vmatprep.subr.bf16.mxu1 %v2689_v11  ;;  %v2765_v10 = vld [vmem:[%s3713_s3 + $0x5f8] ss:$28 sps:$4 sm:$0xff]   ;;  %v2770_v11 = vld [vmem:[%s3713_s3 + $0x244] ss:$28 sps:$4 sm:$0xff]  }
 0x12a   :  { %1893 = vmatpush2.bf16.msra.mxu0 %v2684_v12  ;;  %v2773_v12 = vld [vmem:[%s3713_s3 + $0x5c4] ss:$28 sps:$4 sm:$0xff]  }
 0x12b   :  { %1934 = vmatpush2.bf16.msra.mxu1 %v2687_v13  ;;  %1944 = vmatprep.subr.bf16.mxu0 %v2692_v14  ;;  %v2768_v13 = vld [vmem:[%s3713_s3 + $0x240] ss:$28 sps:$4 sm:$0xff]  }
 0x12c   :  { %1985 = vmatprep.subr.bf16.mxu1 %v2695_v15  ;;  %v2771_v14 = vld [vmem:[%s3713_s3 + $0x5c0] ss:$28 sps:$4 sm:$0xff]   ;;  %v2776_v15 = vld [vmem:[%s3713_s3 + $0x20c] ss:$28 sps:$4 sm:$0xff]  }
 0x12d   :  { %1895 = vmatmul.mubr.bf16.vlgmr.msra.gmra.mxu0 %v3191_v5 }
 0x12e   :  { %1936 = vmatmul.mubr.bf16.vlgmr.msra.gmra.mxu1 %v3198_v8  ;;  %1945 = vmatpush1.bf16.msra.mxu0 %v2690_v16  ;;  %v2779_v16 = vld [vmem:[%s3713_s3 + $0x58c] ss:$28 sps:$4 sm:$0xff]  }
 0x12f   :  { %1976 = vmatprep.mubr.bf16.mxu0 %v3186_v2  ;;  %1986 = vmatpush1.bf16.msra.mxu1 %v2693_v17  ;;  %v2774_v17 = vld [vmem:[%s3713_s3 + $0x208] ss:$28 sps:$4 sm:$0xff]  }
 0x130   :  { %2017 = vmatprep.mubr.bf16.mxu1 %v3193_v6  ;;  %1946 = vmatprep.subr.bf16.mxu0 %v2698_v18  ;;  %v2777_v18 = vld [vmem:[%s3713_s3 + $0x588] ss:$28 sps:$4 sm:$0xff]  }
 0x131   :  { %1987 = vmatprep.subr.bf16.mxu1 %v2701_v19  ;;  %v2782_v19 = vld [vmem:[%s3713_s3 + $0x1d4] ss:$28 sps:$4 sm:$0xff]  }
 0x132   :  { %1947 = vmatpush1.bf16.msra.mxu0 %v2696_v20  ;;  %v2785_v20 = vld [vmem:[%s3713_s3 + $0x554] ss:$28 sps:$4 sm:$0xff]  }
 0x133   :  { %1988 = vmatpush1.bf16.msra.mxu1 %v2699_v21  ;;  %1948 = vmatprep.subr.bf16.mxu0 %v2704_v22  ;;  %v2780_v21 = vld [vmem:[%s3713_s3 + $0x1d0] ss:$28 sps:$4 sm:$0xff]  }
 0x134   :  { %1989 = vmatprep.subr.bf16.mxu1 %v2707_v23  ;;  %v2783_v22 = vld [vmem:[%s3713_s3 + $0x550] ss:$28 sps:$4 sm:$0xff]   ;;  %v2786_v23 = vld [vmem:[%s3713_s3 + $0x360] ss:$28 sps:$4 sm:$0xff]  }
 0x136   :  { %1949 = vmatpush1.bf16.msra.mxu0 %v2702_v24  ;;  %v2787_v24 = vld [vmem:[%s3713_s3 + $0x6e0] ss:$28 sps:$4 sm:$0xff]  }
 0x137   :  { %1990 = vmatpush1.bf16.msra.mxu1 %v2705_v25  ;;  %1950 = vmatprep.subr.bf16.mxu0 %v2710_v26  ;;  %v2788_v25 = vld [vmem:[%s3713_s3 + $0x1a0] ss:$28 sps:$4 sm:$0xff]  }
 0x138   :  { %1991 = vmatprep.subr.bf16.mxu1 %v2713_v27  ;;  %v2789_v26 = vld [vmem:[%s3713_s3 + $0x520] ss:$28 sps:$4 sm:$0xff]   ;;  %v2790_v27 = vld [vmem:[%s3713_s3 + $0x328] ss:$28 sps:$4 sm:$0xff]  }
 0x13a   :  { %1951 = vmatpush1.bf16.msra.mxu0 %v2708_v28  ;;  %v2791_v28 = vld [vmem:[%s3713_s3 + $0x6a8] ss:$28 sps:$4 sm:$0xff]  }
 0x13b   :  { %1992 = vmatpush1.bf16.msra.mxu1 %v2711_v29  ;;  %1952 = vmatprep.subr.bf16.mxu0 %v2716_v30  ;;  %v2792_v29 = vld [vmem:[%s3713_s3 + $0x168] ss:$28 sps:$4 sm:$0xff]  }
 0x13c   :  { %1993 = vmatprep.subr.bf16.mxu1 %v2719_v31  ;;  %v2793_v30 = vld [vmem:[%s3713_s3 + $0x4e8] ss:$28 sps:$4 sm:$0xff]   ;;  %v2794_v31 = vld [vmem:[%s3713_s3 + $0x2f0] ss:$28 sps:$4 sm:$0xff]  }
 0x13e   :  { %1953 = vmatpush1.bf16.msra.mxu0 %v2714_v32  ;;  %v2795_v32 = vld [vmem:[%s3713_s3 + $0x670] ss:$28 sps:$4 sm:$0xff]  }
 0x13f   :  { %1994 = vmatpush1.bf16.msra.mxu1 %v2717_v33  ;;  %1954 = vmatprep.subr.bf16.mxu0 %v2722_v34  ;;  %v2797_v33 = vld [vmem:[%s3713_s3 + $0x4b0] ss:$28 sps:$4 sm:$0xff]   ;;  %v2799_v34 = vld [vmem:[%s3713_s3 + $0x638] ss:$28 sps:$4 sm:$0xff]  }
 0x140   :  { %1995 = vmatprep.subr.bf16.mxu1 %v2725_v35  ;;  %v2800_v35 = vld [vmem:[%s3713_s3 + $0xf8] ss:$28 sps:$4 sm:$0xff]  }
 0x142   :  { %1955 = vmatpush1.bf16.msra.mxu0 %v2720_v36  ;;  %v2801_v36 = vld [vmem:[%s3713_s3 + $0x478] ss:$28 sps:$4 sm:$0xff]  }
 0x143   :  { %1996 = vmatpush1.bf16.msra.mxu1 %v2723_v40  ;;  %1956 = vmatprep.subr.bf16.mxu0 %v2728_v43  ;;  %v2802_v40 = vld [vmem:[%s3713_s3 + $0x280] ss:$28 sps:$4 sm:$0xff]  }
 0x144   :  { %1997 = vmatprep.subr.bf16.mxu1 %v2731_v44  ;;  %v2803_v43 = vld [vmem:[%s3713_s3 + $0x600] ss:$28 sps:$4 sm:$0xff]  }
 0x145   :  { %v2804_v44 = vld [vmem:[%s3713_s3 + $0xc0] ss:$28 sps:$4 sm:$0xff]  }
 0x146   :  { %1957 = vmatpush1.bf16.msra.mxu0 %v2726_v45  ;;  %v2805_v45 = vld [vmem:[%s3713_s3 + $0x440] ss:$28 sps:$4 sm:$0xff]  }
 0x147   :  { %1998 = vmatpush1.bf16.msra.mxu1 %v2729_v46  ;;  %1958 = vmatprep.subr.bf16.mxu0 %v2734_v47  ;;  %v2806_v46 = vld [vmem:[%s3713_s3 + $0x248] ss:$28 sps:$4 sm:$0xff]  }
 0x148   :  { %1999 = vmatprep.subr.bf16.mxu1 %v2737_v48  ;;  %v2807_v47 = vld [vmem:[%s3713_s3 + $0x5c8] ss:$28 sps:$4 sm:$0xff]  }
 0x149   :  { %v2808_v48 = vld [vmem:[%s3713_s3 + $0x88] ss:$28 sps:$4 sm:$0xff]  }
 0x14a   :  { %1959 = vmatpush1.bf16.msra.mxu0 %v2732_v49  ;;  %v2809_v49 = vld [vmem:[%s3713_s3 + $0x408] ss:$28 sps:$4 sm:$0xff]  }
 0x14b   :  { %2000 = vmatpush1.bf16.msra.mxu1 %v2735_v50  ;;  %1960 = vmatprep.subr.bf16.mxu0 %v2740_v51  ;;  %v2810_v50 = vld [vmem:[%s3713_s3 + $0x210] ss:$28 sps:$4 sm:$0xff]  }
 0x14c   :  { %2001 = vmatprep.subr.bf16.mxu1 %v2743_v52  ;;  %v2811_v51 = vld [vmem:[%s3713_s3 + $0x590] ss:$28 sps:$4 sm:$0xff]  }
 0x14d   :  { %v2812_v52 = vld [vmem:[%s3713_s3 + $0x50] ss:$28 sps:$4 sm:$0xff]  }
 0x14e   :  { %1961 = vmatpush2.bf16.msra.mxu0 %v2738_v53  ;;  %v2813_v53 = vld [vmem:[%s3713_s3 + $0x3d0] ss:$28 sps:$4 sm:$0xff]  }
 0x14f   :  { %2002 = vmatpush2.bf16.msra.mxu1 %v2741_v54  ;;  %1962 = vmatprep.subr.bf16.mxu0 %v2746_v55  ;;  %v2814_v54 = vld [vmem:[%s3713_s3 + $0x1d8] ss:$28 sps:$4 sm:$0xff]  }
 0x150   :  { %2003 = vmatprep.subr.bf16.mxu1 %v2749_v56  ;;  %v2815_v55 = vld [vmem:[%s3713_s3 + $0x558] ss:$28 sps:$4 sm:$0xff]  }
 0x151   :  { %v2816_v56 = vld [vmem:[%s3713_s3 + $0x18] ss:$28 sps:$4 sm:$0xff]  }
 0x152   :  { %1963 = vmatpush2.bf16.msra.mxu0 %v2744_v57  ;;  %v2817_v57 = vld [vmem:[%s3713_s3 + $0x398] ss:$28 sps:$4 sm:$0xff]  }
 0x153   :  { %2004 = vmatpush2.bf16.msra.mxu1 %v2747_v58  ;;  %1964 = vmatprep.subr.bf16.mxu0 %v2752_v59  ;;  %v3687_v58 = vld [vmem:[%s3714_s4] sm:$0xff] }
 0x154   :  { %2005 = vmatprep.subr.bf16.mxu1 %v2755_v60  ;;  %v596_v59 = vrot.slane %v3687_v58, %v59_v38  ;;  %v600_v60 = vrot.slane %v3687_v58, %v63_v41  ;;  %v604_v41 = vrot.slane %v3687_v58, %v67_v39 }
 0x156   :  { %1965 = vmatpush2.bf16.msra.mxu0 %v2750_v61 }
 0x157   :  { %2006 = vmatpush2.bf16.msra.mxu1 %v2753_v62  ;;  %1966 = vmatprep.subr.bf16.mxu0 %v2758_v63 }
 0x158   :  { %2007 = vmatprep.subr.bf16.mxu1 %v2761_v0 }
 0x15a   :  { %1967 = vmatpush2.bf16.msra.mxu0 %v2756_v1 }
 0x15b   :  { %2008 = vmatpush2.bf16.msra.mxu1 %v2759_v3  ;;  %1968 = vmatprep.subr.bf16.mxu0 %v2764_v4 }
 0x15c   :  { %2009 = vmatprep.subr.bf16.mxu1 %v2767_v7 }
 0x15e   :  { %1969 = vmatpush2.bf16.msra.mxu0 %v2762_v9 }
 0x15f   :  { %2010 = vmatpush2.bf16.msra.mxu1 %v2765_v10  ;;  %1970 = vmatprep.subr.bf16.mxu0 %v2770_v11 }
 0x160   :  { %2011 = vmatprep.subr.bf16.mxu1 %v2773_v12 }
 0x162   :  { %1971 = vmatpush2.bf16.msra.mxu0 %v2768_v13 }
 0x163   :  { %2012 = vmatpush2.bf16.msra.mxu1 %v2771_v14  ;;  %1972 = vmatprep.subr.bf16.mxu0 %v2776_v15  ;;  %v608_v14 = vrot.slane %v3687_v58, %v71_v42  ;;  %v611_v42 = vsub.s32 4, %v3169_v37 }
 0x164   :  { %2013 = vmatprep.subr.bf16.mxu1 %v2779_v16 }
 0x166   :  { %1973 = vmatpush2.bf16.msra.mxu0 %v2774_v17 }
 0x167   :  { %2014 = vmatpush2.bf16.msra.mxu1 %v2777_v18  ;;  %1974 = vmatprep.subr.bf16.mxu0 %v2782_v19 }
 0x168   :  { %2015 = vmatprep.subr.bf16.mxu1 %v2785_v20 }
 0x16a   :  { %1975 = vmatpush2.bf16.msra.mxu0 %v2780_v21 }
 0x16b   :  { %2016 = vmatpush2.bf16.msra.mxu1 %v2783_v22  ;;  %2404 = vmatprep.subr.bf16.mxu0 %v2786_v23 }
 0x16c   :  { %2426 = vmatprep.subr.bf16.mxu1 %v2787_v24 }
 0x16d   :  { %1977 = vmatmul.mubr.bf16.vlgmr.msra.gmra.mxu0 %v3191_v5 }
 0x16e   :  { %2018 = vmatmul.mubr.bf16.vlgmr.msra.gmra.mxu1 %v3198_v8  ;;  %2405 = vmatpush3.bf16.msra.mxu0 %v2788_v25 }
 0x16f   :  { %2058 = vmatprep.mubr.bf16.mxu0 %v3186_v2  ;;  %2427 = vmatpush3.bf16.msra.mxu1 %v2789_v26  ;;  %v2796_v2 = vld [vmem:[%s3713_s3 + $0x130] ss:$28 sps:$4 sm:$0xff]  }
 0x170   :  { %2098 = vmatprep.mubr.bf16.mxu1 %v3193_v6  ;;  %2406 = vmatprep.subr.bf16.mxu0 %v2790_v27  ;;  %v2798_v6 = vld [vmem:[%s3713_s3 + $0x2b8] ss:$28 sps:$4 sm:$0xff]   ;;  %s2841_s3 = smov [#allocation2]  }
 0x171   :  { %2428 = vmatprep.subr.bf16.mxu1 %v2791_v28  ;;  %s2140_s4 = sshll.u32 %s2841_s3, 4  ;;  %s2141_s4 = int_to_ptr.vmem [resolvable:$true] %s2140_s4 }
 0x172   :  { %2407 = vmatpush3.bf16.msra.mxu0 %v2792_v29  ;;  %s2818_s16 = scalar_lea.vmem %s2141_s4, 896  ;;  %p2823_p1 = scmp.lt.s32.totalorder %s2141_s4, %s2141_s4 }
 0x173   :  { %2429 = vmatpush3.bf16.msra.mxu1 %v2793_v30  ;;  %2408 = vmatprep.subr.bf16.mxu0 %v2794_v31  ;;  %v615_v30 = vsub.s32 5, %v3169_v37  ;;  %v612_v31 = vrot.slane %v3687_v58, %v611_v42  ;;  %p2819_p0 = scmp.ne.s32.totalorder %s2141_s4, %s2818_s16  ;;  %p2824_p2 = scmp.lt.s32.totalorder %s2818_s16, %s2818_s16 }
 0x174   :  { %2430 = vmatprep.subr.bf16.mxu1 %v2795_v32 }
 0x175   :  { %v616_v32 = vrot.slane %v3687_v58, %v615_v30  ;;  %p2825_p3 = por %p2824_p2, %p2823_p1 }
 0x176   :  { %2409 = vmatpush3.bf16.msra.mxu0 %v2796_v2 }
 0x177   :  { %2431 = vmatpush3.bf16.msra.mxu1 %v2797_v33  ;;  %2410 = vmatprep.subr.bf16.mxu0 %v2798_v6  ;;  %p2826_p4 = pnand %p2825_p3, %p2819_p0 }
 0x178   :  { %2432 = vmatprep.subr.bf16.mxu1 %v2799_v34 }
 0x17a   :  { %2411 = vmatpush3.bf16.msra.mxu0 %v2800_v35 }
 0x17b   :  { %2433 = vmatpush3.bf16.msra.mxu1 %v2801_v36  ;;  %2412 = vmatprep.subr.bf16.mxu0 %v2802_v40 }
 0x17c   :  { %2434 = vmatprep.subr.bf16.mxu1 %v2803_v43 }
 0x17e   :  { %2413 = vmatpush3.bf16.msra.mxu0 %v2804_v44 }
 0x17f   :  { %2435 = vmatpush3.bf16.msra.mxu1 %v2805_v45  ;;  %2414 = vmatprep.subr.bf16.mxu0 %v2806_v46 }
 0x180   :  { %2436 = vmatprep.subr.bf16.mxu1 %v2807_v47 }
 0x182   :  { %2415 = vmatpush3.bf16.msra.mxu0 %v2808_v48 }
 0x183   :  { %2437 = vmatpush3.bf16.msra.mxu1 %v2809_v49  ;;  %2416 = vmatprep.subr.bf16.mxu0 %v2810_v50 }
 0x184   :  { %2438 = vmatprep.subr.bf16.mxu1 %v2811_v51 }
 0x186   :  { %2417 = vmatpush3.bf16.msra.mxu0 %v2812_v52  ;;  %v619_v52 = vsub.s32 6, %v3169_v37 }
 0x187   :  { %2439 = vmatpush3.bf16.msra.mxu1 %v2813_v53  ;;  %2418 = vmatprep.subr.bf16.mxu0 %v2814_v54 }
 0x188   :  { %2440 = vmatprep.subr.bf16.mxu1 %v2815_v55  ;;  %v620_v55 = vrot.slane %v3687_v58, %v619_v52 }
 0x18a   :  { %2419 = vmatpush3.bf16.msra.mxu0 %v2816_v56 }
 0x18b   :  { %2441 = vmatpush3.bf16.msra.mxu1 %v2817_v57 }
 0x18d   :  { %2059 = vmatmul.mubr.bf16.vlgmr.msra.gmra.mxu0 %v3191_v5 }
 0x18e   :  { %2099 = vmatmul.mubr.bf16.vlgmr.msra.gmra.mxu1 %v3198_v8 }
 0x1ad   :  { %v1814_v61 = vpop.f32.mrf.mxu0 }
 0x1ae   :  { %v1815_v62 = vadd.f32 %v1814_v61, %v596_v59  ;;  %v1855_v63 = vpop.f32.mrf.mxu1 }
 0x1af   :  { %v1816_v0 = vpop.f32.mrf.mxu0 }
 0x1b0   :  { %v1856_v5 = vadd.f32 %v1855_v63, %v1815_v62  ;;  %v1817_v1 = vadd.f32 %v1816_v0, %v600_v60  ;;  %v1857_v8 = vpop.f32.mrf.mxu1 }
 0x1b1   :  { %v1818_v3 = vpop.f32.mrf.mxu0 }
 0x1b2   :  { %vm2106_vm4 = vcmp.gt.f32.partialorder %v1856_v5, 0.0  ;;  %v2113_v4 = vmul.f32 0.01, %v1856_v5  ;;  %v1858_v7 = vadd.f32 %v1857_v8, %v1817_v1  ;;  %v1859_v9 = vpop.f32.mrf.mxu1 }
 0x1b3   :  { %v1819_v10 = vpop.f32.mrf.mxu0 }
 0x1b4   :  { %v2120_v11 = vsel %vm2106_vm4, %v1856_v5, %v2113_v4  ;;  %vm2107_vm5 = vcmp.gt.f32.partialorder %v1858_v7, 0.0  ;;  %v2114_v38 = vmul.f32 0.01, %v1858_v7  ;;  %v1860_v12 = vpop.f32.mrf.mxu1 }
 0x1b5   :  { %2127 = vst [vmem:[#allocation2] sm:$0xff] %v2120_v11 }
 0x1b6   :  { %v2121_v13 = vsel %vm2107_vm5, %v1858_v7, %v2114_v38 }
 0x1b7   :  { %2128 = vst [vmem:[#allocation2 + $0x8] sm:$0xff] %v2121_v13 }
 0x1ed   :  { %v1896_v15 = vpop.f32.mrf.mxu0 }
 0x1ee   :  { %v1897_v16 = vadd.f32 %v1896_v15, %v604_v41  ;;  %v1937_v17 = vpop.f32.mrf.mxu1 }
 0x1ef   :  { %v1898_v18 = vpop.f32.mrf.mxu0 }
 0x1f0   :  { %v1938_v19 = vadd.f32 %v1937_v17, %v1897_v16  ;;  %v1899_v20 = vadd.f32 %v1898_v18, %v608_v14  ;;  %v1939_v21 = vpop.f32.mrf.mxu1 }
 0x1f1   :  { %v1900_v22 = vpop.f32.mrf.mxu0 }
 0x1f2   :  { %vm2108_vm6 = vcmp.gt.f32.partialorder %v1938_v19, 0.0  ;;  %v2115_v23 = vmul.f32 0.01, %v1938_v19  ;;  %v1940_v24 = vadd.f32 %v1939_v21, %v1899_v20  ;;  %v1941_v25 = vpop.f32.mrf.mxu1 }
 0x1f3   :  { %v1901_v26 = vpop.f32.mrf.mxu0 }
 0x1f4   :  { %v2122_v27 = vsel %vm2108_vm6, %v1938_v19, %v2115_v23  ;;  %vm2109_vm7 = vcmp.gt.f32.partialorder %v1940_v24, 0.0  ;;  %v2116_v39 = vmul.f32 0.01, %v1940_v24  ;;  %v1942_v28 = vpop.f32.mrf.mxu1 }
 0x1f5   :  { %2129 = vst [vmem:[#allocation2 + $0x10] sm:$0xff] %v2122_v27 }
 0x1f6   :  { %v2123_v29 = vsel %vm2109_vm7, %v1940_v24, %v2116_v39 }
 0x1f7   :  { %2130 = vst [vmem:[#allocation2 + $0x18] sm:$0xff] %v2123_v29 }
 0x22d   :  { %v1978_v2 = vpop.f32.mrf.mxu0 }
 0x22e   :  { %v1979_v33 = vadd.f32 %v1978_v2, %v612_v31  ;;  %v2019_v6 = vpop.f32.mrf.mxu1 }
 0x22f   :  { %v1980_v34 = vpop.f32.mrf.mxu0 }
 0x230   :  { %v2020_v35 = vadd.f32 %v2019_v6, %v1979_v33  ;;  %v1981_v36 = vadd.f32 %v1980_v34, %v616_v32  ;;  %v2021_v40 = vpop.f32.mrf.mxu1 }
 0x231   :  { %v1982_v43 = vpop.f32.mrf.mxu0 }
 0x232   :  { %vm2110_vm8 = vcmp.gt.f32.partialorder %v2020_v35, 0.0  ;;  %v2117_v44 = vmul.f32 0.01, %v2020_v35  ;;  %v2022_v45 = vadd.f32 %v2021_v40, %v1981_v36  ;;  %v2023_v46 = vpop.f32.mrf.mxu1 }
 0x233   :  { %v1983_v47 = vpop.f32.mrf.mxu0 }
 0x234   :  { %v2124_v48 = vsel %vm2110_vm8, %v2020_v35, %v2117_v44  ;;  %vm2111_vm9 = vcmp.gt.f32.partialorder %v2022_v45, 0.0  ;;  %v2118_v49 = vmul.f32 0.01, %v2022_v45  ;;  %v2024_v50 = vpop.f32.mrf.mxu1 }
 0x235   :  { %2131 = vst [vmem:[#allocation2 + $0x20] sm:$0xff] %v2124_v48 }
 0x236   :  { %v2125_v51 = vsel %vm2111_vm9, %v2022_v45, %v2118_v49 }
 0x237   :  { %2132 = vst [vmem:[#allocation2 + $0x28] sm:$0xff] %v2125_v51 }
 0x24d   :  { %v2420_v53 = vpop.f32.mrf.mxu0 }
 0x24e   :  { %v2442_v54 = vpop.f32.mrf.mxu1 }
 0x24f   :  { %v2421_v56 = vpop.f32.mrf.mxu0 }
 0x250   :  { %v2422_v57 = vadd.f32 %v2421_v56, %v2420_v53  ;;  %v2443_v59 = vpop.f32.mrf.mxu1 }
 0x251   :  { %v2423_v60 = vpop.f32.mrf.mxu0  ;;  %v2444_v62 = vadd.f32 %v2443_v59, %v2442_v54 }
 0x252   :  { %v2061_v61 = vadd.f32 %v2422_v57, %v620_v55  ;;  %v2445_v63 = vpop.f32.mrf.mxu1 }
 0x253   :  { %v2424_v0 = vpop.f32.mrf.mxu0 }
 0x254   :  { %v2101_v5 = vadd.f32 %v2444_v62, %v2061_v61  ;;  %v2446_v1 = vpop.f32.mrf.mxu1 }
 0x256   :  { %vm2112_vm10 = vcmp.gt.f32.partialorder %v2101_v5, 0.0  ;;  %v2119_v8 = vmul.f32 0.01, %v2101_v5 }
 0x258   :  { %v2126_v37 = vsel %vm2112_vm10, %v2101_v5, %v2119_v8 }
 0x259   :  { %2133 = vst [vmem:[#allocation2 + $0x30] sm:$0xff] %v2126_v37 }
 0x25a   :  { %2829 = shalt.err (!%p2826_p4)
}
 0x25b   :  { %2143 = dma.vmem_to_hbm [thread:$0]  %s2141_s4, 896, %s3715_s5, [#allocation3]  }
 0x25c   :  { %2838 = dma.done.wait [#allocation3], 896  }
 0x25d   :  { %2839 = vsyncadd [#allocation3], 4294966400 }
 0x25e   :  { %2147 = vsyncpa [#allocation3], 1 }

</bundles_post_ra>
